<compile_context>
chip_gen: v5e
topology: v5e:2x2
jax: 0.10.0
libtpu: 0.0.40
codegen_flags: <defaults>
</compile_context>

<pallas_src>
import math
import jax
import jax.numpy as jnp
from jax.experimental import pallas as pl
from jax.experimental.pallas import tpu as pltpu


def _round_up(x, m):
    return ((x + m - 1) // m) * m


def _pick_tile(padded, unit, cap):
    """Largest multiple of `unit` that divides `padded` and is <= cap."""
    best = unit
    t = unit
    limit = min(cap, padded)
    while t <= limit:
        if padded % t == 0:
            best = t
        t += unit
    return best


def _rnn_cell_kernel(xh_ref, w_ref, b_ref, out_ref, acc_ref):
    """One (TM, TN) output tile, accumulated over the K grid axis."""
    k = pl.program_id(2)

    @pl.when(k == 0)
    def _():
        # Fold the bias into the accumulator init (saves an epilogue VPU add).
        acc_ref[...] = jnp.broadcast_to(b_ref[...], acc_ref.shape)

    # Single fused matmul on the MXU, f32 accumulation.
    acc_ref[...] += jnp.dot(
        xh_ref[...], w_ref[...], preferred_element_type=jnp.float32
    )

    @pl.when(k == pl.num_programs(2) - 1)
    def _():
        # tanh epilogue in f32, once per output tile.
        out_ref[...] = jnp.tanh(acc_ref[...]).astype(out_ref.dtype)


def fuse_rnn_cell_params(w_ih, b_ih, w_hh, b_hh, *, compute_dtype=jnp.bfloat16):
    """Build the fused / padded weight ONCE, outside the per-step path.

    Returns (w_fused_padded [Kp, Hp], bias_padded [1, Hp] f32,
             (input_size, hidden_size)).
    Zero padding keeps the math exact.
    """
    input_size, hidden = w_ih.shape
    K = input_size + hidden
    Kp = _round_up(K, 128)
    Hp = _round_up(hidden, 128)

    w = jnp.concatenate([w_ih, w_hh], axis=0)                  # [K, H]
    if compute_dtype is not None:
        w = w.astype(compute_dtype)
    w_p = jnp.pad(w, ((0, Kp - K), (0, Hp - hidden)))

    b = (b_ih + b_hh).astype(jnp.float32).reshape(1, hidden)   # pre-summed bias
    b_p = jnp.pad(b, ((0, 0), (0, Hp - hidden)))
    return w_p, b_p, (input_size, hidden)


def rnn_cell_forward_fused(
    x, h, w_fused, b_fused, dims, *,
    compute_dtype=jnp.bfloat16,
    tm_cap=256, tn_cap=512, tk_cap=512,
    out_dtype=None,
):
    """new_h = tanh([x|h] @ w_fused + b_fused), with pre-fused/padded weights."""
    input_size, hidden = dims
    batch = x.shape[0]
    K = input_size + hidden
    Kp, Hp = w_fused.shape
    out_dtype = out_dtype or x.dtype

    # Per-call activation prep (cheap: B x K, weight is the dominant traffic).
    xh = jnp.concatenate([x, h], axis=1)                       # [B, K]
    if compute_dtype is not None:
        xh = xh.astype(compute_dtype)

    # --- tile sizes: divisor-friendly, lane dims multiples of 128 ----------
    Bp = _round_up(batch, 8)
    TM = _pick_tile(Bp, 8, tm_cap)
    TN = _pick_tile(Hp, 128, tn_cap)
    TK = _pick_tile(Kp, 128, tk_cap)

    # v7x megacore: guarantee >= 2 'parallel' output tiles when possible so
    # the second TensorCore is not idle (no effect on v5e/v6e).
    if (Bp // TM) * (Hp // TN) == 1 and Hp >= 256:
        TN = _pick_tile(Hp, 128, Hp // 2)

    xh_p = jnp.pad(xh, ((0, Bp - batch), (0, Kp - K)))

    grid = (Bp // TM, Hp // TN, Kp // TK)

    out_p = pl.pallas_call(
        _rnn_cell_kernel,
        out_shape=jax.ShapeDtypeStruct((Bp, Hp), out_dtype),
        grid_spec=pltpu.PrefetchScalarGridSpec(
            num_scalar_prefetch=0,
            grid=grid,
            in_specs=[
                pl.BlockSpec((TM, TK), lambda i, j, k: (i, k)),   # [x|h] tile
                pl.BlockSpec((TK, TN), lambda i, j, k: (k, j)),   # fused W tile
                pl.BlockSpec((1, TN), lambda i, j, k: (0, j)),    # fused bias
            ],
            out_specs=pl.BlockSpec((TM, TN), lambda i, j, k: (i, j)),
            scratch_shapes=[pltpu.VMEM((TM, TN), jnp.float32)],
        ),
        compiler_params=pltpu.CompilerParams(
            dimension_semantics=("parallel", "parallel", "arbitrary")
        ),
    )(xh_p, w_fused, b_fused)

    return out_p[:batch, :hidden]


def rnn_cell_forward(x, h, w_ih, b_ih, w_hh, b_hh, *, compute_dtype=jnp.bfloat16):
    """Convenience wrapper (one-off use). For repeated stepping, call
    fuse_rnn_cell_params once and reuse its output with rnn_cell_forward_fused."""
    w_f, b_f, dims = fuse_rnn_cell_params(
        w_ih, b_ih, w_hh, b_hh, compute_dtype=compute_dtype
    )
    return rnn_cell_forward_fused(x, h, w_f, b_f, dims, compute_dtype=compute_dtype)


def init_params(key, input_size, hidden_size, dtype=jnp.float32):
    stdv = 1.0 / math.sqrt(hidden_size)
    k1, k2, k3, k4 = jax.random.split(key, 4)
    w_ih = jax.random.uniform(k1, (input_size, hidden_size), dtype, -stdv, stdv)
    b_ih = jax.random.uniform(k2, (hidden_size,), dtype, -stdv, stdv)
    w_hh = jax.random.uniform(k3, (hidden_size, hidden_size), dtype, -stdv, stdv)
    b_hh = jax.random.uniform(k4, (hidden_size,), dtype, -stdv, stdv)
    return w_ih, b_ih, w_hh, b_hh


if __name__ == "__main__":
    batch, input_size, hidden_size = 2, 16, 32

    key = jax.random.PRNGKey(0)
    kp, kx, kh = jax.random.split(key, 3)

    w_ih, b_ih, w_hh, b_hh = init_params(kp, input_size, hidden_size)
    x = jax.random.normal(kx, (batch, input_size), jnp.float32)
    h = jax.random.normal(kh, (batch, hidden_size), jnp.float32)

    # Pure-JAX f32 reference.
    ref = jnp.tanh(x @ w_ih + b_ih + h @ w_hh + b_hh)

    # --- exact f32 compute path (tight tolerance) --------------------------
    w_f32, b_f32, dims = fuse_rnn_cell_params(
        w_ih, b_ih, w_hh, b_hh, compute_dtype=jnp.float32
    )
    out_f32 = rnn_cell_forward_fused(
        x, h, w_f32, b_f32, dims, compute_dtype=jnp.float32
    )
    out_f32 = jax.block_until_ready(out_f32)
    assert out_f32.shape == (batch, hidden_size)
    assert jnp.allclose(out_f32, ref, atol=1e-5, rtol=1e-5)

    # --- default bf16 compute path (f32 accumulate; looser tolerance) ------
    w_bf, b_bf, dims = fuse_rnn_cell_params(w_ih, b_ih, w_hh, b_hh)
    out_bf = jax.block_until_ready(
        rnn_cell_forward_fused(x, h, w_bf, b_bf, dims)
    )
    assert out_bf.shape == (batch, hidden_size)
    assert jnp.allclose(out_bf, ref, atol=3e-2, rtol=3e-2)

    print("KERNEL_OK")
</pallas_src>

<mosaic_0001>
module attributes {stable_mosaic.version = 11 : i64} {
  func.func @_rnn_cell_kernel(%arg0: i32, %arg1: i32, %arg2: i32, %arg3: memref<8x128xf32, #tpu.memory_space<vmem>>, %arg4: memref<128x128xf32, #tpu.memory_space<vmem>>, %arg5: memref<1x128xf32, #tpu.memory_space<vmem>>, %arg6: memref<8x128xf32, #tpu.memory_space<vmem>>, %arg7: memref<8x128xf32, #tpu.memory_space<vmem>>) attributes {dimension_semantics = [#tpu.dimension_semantics<parallel>, #tpu.dimension_semantics<parallel>, #tpu.dimension_semantics<arbitrary>], iteration_bounds = array<i64: 1, 1, 1>, scalar_prefetch = 0 : i64, scratch_operands = 1 : i64, tpu.core_type = #tpu.core_type<tc>, window_params = [{transform_indices = @transform_0, window_bounds = array<i64: 8, 128>}, {transform_indices = @transform_1, window_bounds = array<i64: 128, 128>}, {transform_indices = @transform_2, window_bounds = array<i64: 1, 128>}, {transform_indices = @transform_3, window_bounds = array<i64: 8, 128>}]} {
    %c0_i32 = arith.constant 0 : i32
    %0 = arith.cmpi eq, %arg2, %c0_i32 : i32
    %1 = arith.extui %0 : i1 to i32
    %c0_i32_0 = arith.constant 0 : i32
    %2 = arith.cmpi ne, %1, %c0_i32_0 : i32
    scf.if %2 {
      %c0_10 = arith.constant 0 : index
      %c0_11 = arith.constant 0 : index
      %12 = vector.load %arg5[%c0_10, %c0_11] : memref<1x128xf32, #tpu.memory_space<vmem>>, vector<1x128xf32>
      %13 = vector.shape_cast %12 : vector<1x128xf32> to vector<1x128xf32>
      %14 = vector.broadcast %13 : vector<1x128xf32> to vector<8x128xf32>
      %c0_12 = arith.constant 0 : index
      %c0_13 = arith.constant 0 : index
      %15 = vector.load %arg7[%c0_12, %c0_13] : memref<8x128xf32, #tpu.memory_space<vmem>>, vector<8x128xf32>
      tpu.vector_store %arg7[%c0_12, %c0_13], %14 {strides = array<i32>} : memref<8x128xf32, #tpu.memory_space<vmem>>, vector<8x128xf32>,
    } else {
    }
    %c0 = arith.constant 0 : index
    %c0_1 = arith.constant 0 : index
    %3 = vector.load %arg7[%c0, %c0_1] : memref<8x128xf32, #tpu.memory_space<vmem>>, vector<8x128xf32>
    %c0_2 = arith.constant 0 : index
    %c0_3 = arith.constant 0 : index
    %4 = vector.load %arg3[%c0_2, %c0_3] : memref<8x128xf32, #tpu.memory_space<vmem>>, vector<8x128xf32>
    %c0_4 = arith.constant 0 : index
    %c0_5 = arith.constant 0 : index
    %5 = vector.load %arg4[%c0_4, %c0_5] : memref<128x128xf32, #tpu.memory_space<vmem>>, vector<128x128xf32>
    %cst = arith.constant dense<0.000000e+00> : vector<8x128xf32>
    %6 = tpu.matmul %4, %5, %cst {dimension_numbers = #tpu.dot_dimension_numbers<[1], [0], [0], [1], [0, 0, 1, 1], [], []>} : vector<8x128xf32>, vector<128x128xf32>, vector<8x128xf32> -> vector<8x128xf32>
    %7 = arith.addf %3, %6 : vector<8x128xf32>
    %c0_6 = arith.constant 0 : index
    %c0_7 = arith.constant 0 : index
    %8 = vector.load %arg7[%c0_6, %c0_7] : memref<8x128xf32, #tpu.memory_space<vmem>>, vector<8x128xf32>
    tpu.vector_store %arg7[%c0_6, %c0_7], %7 {strides = array<i32>} : memref<8x128xf32, #tpu.memory_space<vmem>>, vector<8x128xf32>,
    %c0_i32_8 = arith.constant 0 : i32
    %9 = arith.cmpi eq, %arg2, %c0_i32_8 : i32
    %10 = arith.extui %9 : i1 to i32
    %c0_i32_9 = arith.constant 0 : i32
    %11 = arith.cmpi ne, %10, %c0_i32_9 : i32
    scf.if %11 {
      %c0_10 = arith.constant 0 : index
      %c0_11 = arith.constant 0 : index
      %12 = vector.load %arg7[%c0_10, %c0_11] : memref<8x128xf32, #tpu.memory_space<vmem>>, vector<8x128xf32>
      %13 = math.tanh %12 : vector<8x128xf32>
      %c0_12 = arith.constant 0 : index
      %c0_13 = arith.constant 0 : index
      %14 = vector.load %arg6[%c0_12, %c0_13] : memref<8x128xf32, #tpu.memory_space<vmem>>, vector<8x128xf32>
      tpu.vector_store %arg6[%c0_12, %c0_13], %13 {strides = array<i32>} : memref<8x128xf32, #tpu.memory_space<vmem>>, vector<8x128xf32>,
    } else {
    }
    return
  }
  func.func @transform_0(%arg0: i32, %arg1: i32, %arg2: i32) -> (i32, i32) {
    %c0_i32 = arith.constant 0 : i32
    return %arg0, %arg2 : i32, i32
  }
  func.func @transform_1(%arg0: i32, %arg1: i32, %arg2: i32) -> (i32, i32) {
    %c0_i32 = arith.constant 0 : i32
    return %arg2, %arg1 : i32, i32
  }
  func.func @transform_2(%arg0: i32, %arg1: i32, %arg2: i32) -> (i32, i32) {
    %c0_i32 = arith.constant 0 : i32
    %c0_i32_0 = arith.constant 0 : i32
    return %c0_i32, %arg1 : i32, i32
  }
  func.func @transform_3(%arg0: i32, %arg1: i32, %arg2: i32) -> (i32, i32) {
    %c0_i32 = arith.constant 0 : i32
    return %arg0, %arg1 : i32, i32
  }
}

</mosaic_0001>

<bundles_post_ra>
// kernel: tpu_custom_call.1
= control target key start
LH: loop header
LB: loop body
LE: loop exit
PB: predicated region body
PF: predicated region fallthrough
CT: control target
= control target key end

     0   :  { %8 = vsyncpa [#allocation4], 0  ;;  %s241_s0 = inlined_call_operand.hbm [shape: f32[8,128], index: 0, kind: input, shape index: {}]   ;;  %s242_s1 = inlined_call_operand.hbm [shape: f32[128,128], index: 1, kind: input, shape index: {}]   ;;  %s243_s2 = inlined_call_operand.vmem [shape: f32[1,128], index: 2, kind: input, shape index: {}]   ;;  %s244_s3 = inlined_call_operand.hbm [shape: f32[8,128], index: 3, kind: output, shape index: {}]  }
   0x1   :  { %9 = vsyncpa [#allocation7], 0 }
   0x2   :  { %10 = vsyncpa [#allocation5], 0  ;;  %s16_s14 = sshll.u32 %s241_s0, 4  ;;  %s204_s15 = smov [#allocation3]   ;;  %s17_s14 = int_to_ptr.hbm [resolvable:$true] %s16_s14 }
   0x3   :  { %s18_s16 = sshll.u32 %s204_s15, 4  ;;  %s26_s19 = sshll.u32 %s242_s1, 4  ;;  %s19_s16 = int_to_ptr.vmem [resolvable:$true] %s18_s16  ;;  %s27_s19 = int_to_ptr.hbm [resolvable:$true] %s26_s19 }
   0x4   :  { %21 = dma.hbm_to_vmem [thread:$0]  %s17_s14, 128, %s19_s16, [#allocation4]  }
   0x5   :  { %s205_s20 = smov [#allocation6]   ;;  %s206_s22 = smov 128  }
   0x6   :  { %s28_s21 = sshll.u32 %s205_s20, 4  ;;  %s207_s23 = smov 8   ;;  %s29_s21 = int_to_ptr.vmem [resolvable:$true] %s28_s21 }
   0x7   :  { %34 = dma.hbm_to_vmem [thread:$0]  %s27_s19, 2048, %s29_s21, [#allocation7], %s206_s22, %s206_s22, %s207_s23  }
   0x8   :  { %198 = dma.done.wait [#allocation4], 128  }
   0x9   :  { %199 = vsyncadd [#allocation4], 4294967168 }
   0xa   :  { %200 = dma.done.wait [#allocation7], 2048  }
   0xb   :  { %201 = vsyncadd [#allocation7], 4294965248  ;;  %v71_v0 = vld [vmem:[#allocation6 + $0x78] sm:$0xff]  ;;  %v70_v1 = vld [vmem:[#allocation6 + $0x70] sm:$0xff]  ;;  %s208_s24 = smov [#allocation8]   ;;  %s107_s28 = sshll.u32 %s244_s3, 4  ;;  %s108_s28 = int_to_ptr.hbm [resolvable:$true] %s107_s28 }
   0xc   :  { %72 = vmatpush.msra.mxu0 %v71_v0  ;;  %v69_v2 = vld [vmem:[#allocation6 + $0x68] sm:$0xff]  ;;  %v68_v3 = vld [vmem:[#allocation6 + $0x60] sm:$0xff]  ;;  %v67_v4 = vld [vmem:[#allocation6 + $0x58] sm:$0xff]  ;;  %s105_s25 = sshll.u32 %s208_s24, 4  ;;  %s106_s25 = int_to_ptr.vmem [resolvable:$true] %s105_s25 }
   0xd   :  { %v66_v5 = vld [vmem:[#allocation6 + $0x50] sm:$0xff]  ;;  %v65_v6 = vld [vmem:[#allocation6 + $0x48] sm:$0xff]  ;;  %v64_v7 = vld [vmem:[#allocation6 + $0x40] sm:$0xff] }
   0xe   :  { %73 = vmatpush.msra.mxu0 %v70_v1  ;;  %v63_v8 = vld [vmem:[#allocation6 + $0x38] sm:$0xff]  ;;  %v62_v9 = vld [vmem:[#allocation6 + $0x30] sm:$0xff]  ;;  %v61_v10 = vld [vmem:[#allocation6 + $0x28] sm:$0xff] }
   0xf   :  { %v60_v11 = vld [vmem:[#allocation6 + $0x20] sm:$0xff]  ;;  %v59_v12 = vld [vmem:[#allocation6 + $0x18] sm:$0xff]  ;;  %v58_v13 = vld [vmem:[#allocation6 + $0x10] sm:$0xff] }
  0x10   :  { %74 = vmatpush.msra.mxu0 %v69_v2  ;;  %v57_v14 = vld [vmem:[#allocation6 + $0x8] sm:$0xff]  ;;  %v56_v15 = vld [vmem:[#allocation6] sm:$0xff]  ;;  %v55_v16 = vld [vmem:[#allocation3] sm:$0xff] }
  0x11   :  { %v123_v17 = vld [vmem:[%s243_s2] ss:$0 sm:$0xff] }
  0x12   :  { %75 = vmatpush.msra.mxu0 %v68_v3 }
  0x14   :  { %76 = vmatpush.msra.mxu0 %v67_v4 }
  0x16   :  { %77 = vmatpush.msra.mxu0 %v66_v5 }
  0x18   :  { %78 = vmatpush.msra.mxu0 %v65_v6 }
  0x1a   :  { %79 = vmatpush.msra.mxu0 %v64_v7 }
  0x1c   :  { %80 = vmatpush.msra.mxu0 %v63_v8 }
  0x1e   :  { %81 = vmatpush.msra.mxu0 %v62_v9 }
  0x20   :  { %82 = vmatpush.msra.mxu0 %v61_v10 }
  0x22   :  { %83 = vmatpush.msra.mxu0 %v60_v11 }
  0x24   :  { %84 = vmatpush.msra.mxu0 %v59_v12 }
  0x26   :  { %85 = vmatpush.msra.mxu0 %v58_v13 }
  0x28   :  { %86 = vmatpush.msra.mxu0 %v57_v14 }
  0x2a   :  { %87 = vmatpush.msra.mxu0 %v56_v15 }
  0x2b   :  { %88 = vmatmul.f32.vlgmr.msra.gmra.mxu0 %v55_v16 }
  0xa8   :  { %v89_v18 = vpop.f32.mrf.mxu0 }
  0xa9   :  { %v92_v19 = vadd.f32 %v123_v17, %v89_v18 }
  0xab   :  { %124 = vtanh.f32 %v92_v19 }
  0xb1   :  { %v125_v20 = vpop.eup %124 }
  0xb2   :  { %99 = vst [vmem:[#allocation8] sm:$0xff] %v125_v20 }
  0xb3   :  { %110 = dma.vmem_to_hbm [thread:$0]  %s106_s25, 128, %s108_s28, [#allocation5]  }
  0xb4   :  { %202 = dma.done.wait [#allocation5], 128  }
  0xb5   :  { %203 = vsyncadd [#allocation5], 4294967168 }
  0xb6   :  { %115 = vsyncpa [#allocation4], 1 }
  0xb7   :  { %116 = vsyncpa [#allocation7], 1 }
  0xb8   :  { %117 = vsyncpa [#allocation5], 1 }

</bundles_post_ra>
